<compile_context>
chip_gen: v7x
topology: tpu7x:2x2x1
jax: 0.10.0
libtpu: 0.0.40
codegen_flags: <defaults>
</compile_context>

<pallas_src>
import functools

import jax
import jax.numpy as jnp
from jax.experimental import pallas as pl
from jax.experimental.pallas import tpu as pltpu


# ---------------------------------------------------------------------------
# 1-D linear interpolation matrix (align_corners=True, like nn.Upsample).
# ---------------------------------------------------------------------------
def _interp_matrix(n_out, n_in):
    i = jnp.arange(n_out, dtype=jnp.float32)
    denom = max(n_out - 1, 1)
    src = i * (n_in - 1) / denom
    i0 = jnp.clip(jnp.floor(src).astype(jnp.int32), 0, n_in - 1)
    i1 = jnp.clip(i0 + 1, 0, n_in - 1)
    frac = src - i0.astype(jnp.float32)
    cols = jnp.arange(n_in)[None, :]
    A = ((cols == i0[:, None]).astype(jnp.float32) * (1.0 - frac)[:, None]
         + (cols == i1[:, None]).astype(jnp.float32) * frac[:, None])
    return A  # (n_out, n_in)


# ---------------------------------------------------------------------------
# Fused Up kernel: upsample + pad + concat + (conv3x3+BN+ReLU) x2, per batch.
# ---------------------------------------------------------------------------
def _up_fused_kernel(x1_ref, x2_ref, u_ref, mask_ref,
                     w1t_ref, s1_ref, b1_ref,
                     w2t_ref, s2_ref, b2_ref,
                     o_ref,
                     xb1, xb2, p1, p2,
                     *, C1, C2, Cmid, Cout, H, W):
    L = H * W
    PAD = W + 1          # zero-column halo on each side of the flat image
    Cin = C1 + C2

    def conv3x3(xb, patch, wT_ref, C):
        # xb: (C, PAD + L + PAD) scratch, image at columns [PAD, PAD+L), halos = 0.
        # Builds the im2col patch (9*C, L) with contiguous lane slices, then one
        # MXU matmul (Co, 9*C) @ (9*C, L) -> lane-dense (Co, L) accumulator.
        for k in range(9):
            dy, dx = k // 3, k % 3
            shift = (dy - 1) * W + (dx - 1)
            tap = xb[:, PAD + shift: PAD + shift + L]            # (C, L)
            if dx != 1:
                # kill the columns where the flat shift wraps across image rows
                tap = tap * mask_ref[dx // 2: dx // 2 + 1, :]    # (1, L) bcast
            patch[k * C:(k + 1) * C, :] = tap
        return jnp.dot(wT_ref[...], patch[...],
                       preferred_element_type=jnp.float32)       # (Co, L)

    # ---- bilinear x2 upsample of x1 (+ centering pad): ONE matmul ----------
    x1u = jnp.dot(x1_ref[0], u_ref[...],
                  preferred_element_type=jnp.float32)            # (C1, L)

    # ---- conv1 input: [x2 ; up(x1)] channel-stacked, zero halos (in VMEM) --
    z1 = jnp.zeros((Cin, PAD), jnp.float32)
    xb1[:, :PAD] = z1
    xb1[:, PAD + L:] = z1
    xb1[0:C2, PAD:PAD + L] = x2_ref[0]
    xb1[C2:Cin, PAD:PAD + L] = x1u

    # ---- conv1 + folded BN + ReLU ------------------------------------------
    h1 = conv3x3(xb1, p1, w1t_ref, Cin)                          # (Cmid, L)
    h1 = jnp.maximum(h1 * s1_ref[...] + b1_ref[...], 0.0)

    # ---- conv2 input (intermediate never leaves VMEM) ----------------------
    z2 = jnp.zeros((Cmid, PAD), jnp.float32)
    xb2[:, :PAD] = z2
    xb2[:, PAD + L:] = z2
    xb2[:, PAD:PAD + L] = h1

    # ---- conv2 + folded BN + ReLU ------------------------------------------
    h2 = conv3x3(xb2, p2, w2t_ref, Cmid)                         # (Cout, L)
    h2 = jnp.maximum(h2 * s2_ref[...] + b2_ref[...], 0.0)

    o_ref[0] = h2.astype(o_ref.dtype)                            # lane-dense store


# ---------------------------------------------------------------------------
# Up.forward
# ---------------------------------------------------------------------------
def up_forward(params, x1, x2):
    # x1: (N, C1, H1, W1)  x2: (N, C2, H2, W2), both NCHW float32
    N, C1, H1, W1 = x1.shape
    _, C2, H2, W2 = x2.shape
    Cin = C1 + C2
    Cmid = params['w1'].shape[-1]
    Cout = params['w2'].shape[-1]
    L = H2 * W2
    Ho, Wo = 2 * H1, 2 * W1
    padT = (H2 - Ho) // 2
    padL = (W2 - Wo) // 2

    # Combined (upsample + F.pad centering) matrix: (H1*W1, H2*W2).
    Ah = _interp_matrix(Ho, H1)
    Aw = _interp_matrix(Wo, W1)
    U = jnp.einsum('yh,xw->hwyx', Ah, Aw).reshape(H1 * W1, Ho, Wo)
    U = jnp.pad(U, ((0, 0), (padT, H2 - Ho - padT), (padL, W2 - Wo - padL)))
    U = U.reshape(H1 * W1, L)

    # Within-row wrap masks for the dx=0 (left) and dx=2 (right) taps.
    col = jnp.arange(L, dtype=jnp.int32) % W2
    mask = jnp.stack([(col != 0).astype(jnp.float32),
                      (col != W2 - 1).astype(jnp.float32)], axis=0)   # (2, L)

    # Fold conv bias + eval-mode BN into per-output-channel scale / bias, and
    # flatten the 3x3 weights for the im2col matmul: (Co, 9*Cin).
    def fold(w, b, g, be, m, v, eps=1e-5):
        ci, co = w.shape[2], w.shape[3]
        scale = g / jnp.sqrt(v + eps)
        bias = (b - m) * scale + be
        wT = w.reshape(9 * ci, co).T
        return wT, scale.reshape(co, 1), bias.reshape(co, 1)

    w1t, s1, b1 = fold(params['w1'], params['b1'], params['g1'],
                       params['be1'], params['m1'], params['v1'])
    w2t, s2, b2 = fold(params['w2'], params['b2'], params['g2'],
                       params['be2'], params['m2'], params['v2'])

    # Free metadata reshapes of the NCHW inputs (no transpose / copy).
    x1f = x1.reshape(N, C1, H1 * W1)
    x2f = x2.reshape(N, C2, L)

    kern = functools.partial(_up_fused_kernel, C1=C1, C2=C2,
                             Cmid=Cmid, Cout=Cout, H=H2, W=W2)
    out = pl.pallas_call(
        kern,
        out_shape=jax.ShapeDtypeStruct((N, Cout, L), jnp.float32),
        grid=(N,),
        in_specs=[
            pl.BlockSpec((1, C1, H1 * W1), lambda n: (n, 0, 0)),
            pl.BlockSpec((1, C2, L), lambda n: (n, 0, 0)),
            pl.BlockSpec((H1 * W1, L), lambda n: (0, 0)),
            pl.BlockSpec((2, L), lambda n: (0, 0)),
            pl.BlockSpec((Cmid, 9 * Cin), lambda n: (0, 0)),
            pl.BlockSpec((Cmid, 1), lambda n: (0, 0)),
            pl.BlockSpec((Cmid, 1), lambda n: (0, 0)),
            pl.BlockSpec((Cout, 9 * Cmid), lambda n: (0, 0)),
            pl.BlockSpec((Cout, 1), lambda n: (0, 0)),
            pl.BlockSpec((Cout, 1), lambda n: (0, 0)),
        ],
        out_specs=pl.BlockSpec((1, Cout, L), lambda n: (n, 0, 0)),
        scratch_shapes=[
            pltpu.VMEM((Cin, L + 2 * (W2 + 1)), jnp.float32),    # conv1 haloed input
            pltpu.VMEM((Cmid, L + 2 * (W2 + 1)), jnp.float32),   # conv2 haloed input
            pltpu.VMEM((9 * Cin, L), jnp.float32),               # conv1 im2col patch
            pltpu.VMEM((9 * Cmid, L), jnp.float32),              # conv2 im2col patch
        ],
        compiler_params=pltpu.CompilerParams(
            dimension_semantics=("parallel",)),
    )(x1f, x2f, U, mask, w1t, s1, b1, w2t, s2, b2)

    # Free metadata reshape back to NCHW.
    return out.reshape(N, Cout, H2, W2)


# ---------------------------------------------------------------------------
# Parameter init (deterministic, shapes follow the PyTorch module).
# ---------------------------------------------------------------------------
def init_up_params(key, in_channels, out_channels, mid_channels):
    ks = jax.random.split(key, 12)

    def conv_init(kw, kb, ci, co):
        bound = 1.0 / jnp.sqrt(ci * 9.0)
        # PyTorch Conv2d weight is (Cout, Cin, 3, 3); we generate HWIO directly.
        w = jax.random.uniform(kw, (3, 3, ci, co), jnp.float32, -bound, bound)
        b = jax.random.uniform(kb, (co,), jnp.float32, -bound, bound)
        return w, b

    def bn_init(kg, kb, km, kv, c):
        g = jax.random.uniform(kg, (c,), jnp.float32, 0.5, 1.5)
        be = 0.1 * jax.random.normal(kb, (c,), jnp.float32)
        m = 0.1 * jax.random.normal(km, (c,), jnp.float32)
        v = jax.random.uniform(kv, (c,), jnp.float32, 0.5, 1.5)
        return g, be, m, v

    w1, b1 = conv_init(ks[0], ks[1], in_channels, mid_channels)
    g1, be1, m1, v1 = bn_init(ks[2], ks[3], ks[4], ks[5], mid_channels)
    w2, b2 = conv_init(ks[6], ks[7], mid_channels, out_channels)
    g2, be2, m2, v2 = bn_init(ks[8], ks[9], ks[10], ks[11], out_channels)
    return dict(w1=w1, b1=b1, g1=g1, be1=be1, m1=m1, v1=v1,
                w2=w2, b2=b2, g2=g2, be2=be2, m2=m2, v2=v2)


if __name__ == "__main__":
    key = jax.random.PRNGKey(0)
    k_x1, k_x2, k_p = jax.random.split(key, 3)

    N = 2
    C1, C2 = 4, 4                  # x1 / x2 channels; concat -> in_channels
    H1 = W1 = 8                    # x1 spatial (gets upsampled x2)
    H2 = W2 = 16                   # x2 spatial
    in_channels = C1 + C2          # 8
    out_channels = 4
    mid_channels = in_channels // 2    # bilinear=True path of Up

    x1 = jax.random.normal(k_x1, (N, C1, H1, W1), jnp.float32)
    x2 = jax.random.normal(k_x2, (N, C2, H2, W2), jnp.float32)
    params = init_up_params(k_p, in_channels, out_channels, mid_channels)

    out = jax.jit(up_forward)(params, x1, x2)
    out = jax.block_until_ready(out)
    assert out.shape == (N, out_channels, H2, W2), out.shape
    assert bool(jnp.all(jnp.isfinite(out)))
    print("KERNEL_OK")
</pallas_src>

<mosaic_0001>
module attributes {stable_mosaic.version = 11 : i64} {
  func.func @_up_fused_kernel(%arg0: i32, %arg1: memref<1x4x64xf32, #tpu.memory_space<vmem>>, %arg2: memref<1x4x256xf32, #tpu.memory_space<vmem>>, %arg3: memref<64x256xf32, #tpu.memory_space<vmem>>, %arg4: memref<2x256xf32, #tpu.memory_space<vmem>>, %arg5: memref<4x72xf32, #tpu.memory_space<vmem>>, %arg6: memref<4x1xf32, #tpu.memory_space<vmem>>, %arg7: memref<4x1xf32, #tpu.memory_space<vmem>>, %arg8: memref<4x36xf32, #tpu.memory_space<vmem>>, %arg9: memref<4x1xf32, #tpu.memory_space<vmem>>, %arg10: memref<4x1xf32, #tpu.memory_space<vmem>>, %arg11: memref<1x4x256xf32, #tpu.memory_space<vmem>>, %arg12: memref<8x290xf32, #tpu.memory_space<vmem>>, %arg13: memref<4x290xf32, #tpu.memory_space<vmem>>, %arg14: memref<72x256xf32, #tpu.memory_space<vmem>>, %arg15: memref<36x256xf32, #tpu.memory_space<vmem>>) attributes {dimension_semantics = [#tpu.dimension_semantics<parallel>], iteration_bounds = array<i64: 2>, scalar_prefetch = 0 : i64, scratch_operands = 4 : i64, tpu.core_type = #tpu.core_type<tc>, window_params = [{transform_indices = @transform_0, window_bounds = array<i64: 1, 4, 64>}, {transform_indices = @transform_1, window_bounds = array<i64: 1, 4, 256>}, {pipeline_mode = #tpu.pipeline_mode<synchronous>, transform_indices = @transform_2, window_bounds = array<i64: 64, 256>}, {pipeline_mode = #tpu.pipeline_mode<synchronous>, transform_indices = @transform_3, window_bounds = array<i64: 2, 256>}, {pipeline_mode = #tpu.pipeline_mode<synchronous>, transform_indices = @transform_4, window_bounds = array<i64: 4, 72>}, {pipeline_mode = #tpu.pipeline_mode<synchronous>, transform_indices = @transform_5, window_bounds = array<i64: 4, 1>}, {pipeline_mode = #tpu.pipeline_mode<synchronous>, transform_indices = @transform_6, window_bounds = array<i64: 4, 1>}, {pipeline_mode = #tpu.pipeline_mode<synchronous>, transform_indices = @transform_7, window_bounds = array<i64: 4, 36>}, {pipeline_mode = #tpu.pipeline_mode<synchronous>, transform_indices = @transform_8, window_bounds = array<i64: 4, 1>}, {pipeline_mode = #tpu.pipeline_mode<synchronous>, transform_indices = @transform_9, window_bounds = array<i64: 4, 1>}, {transform_indices = @transform_10, window_bounds = array<i64: 1, 4, 256>}]} {
    %c0 = arith.constant 0 : index
    %c0_0 = arith.constant 0 : index
    %c0_1 = arith.constant 0 : index
    %0 = vector.load %arg1[%c0, %c0_0, %c0_1] : memref<1x4x64xf32, #tpu.memory_space<vmem>>, vector<1x4x64xf32>
    %1 = vector.shape_cast %0 : vector<1x4x64xf32> to vector<4x64xf32>
    %c0_2 = arith.constant 0 : index
    %c0_3 = arith.constant 0 : index
    %2 = vector.load %arg3[%c0_2, %c0_3] : memref<64x256xf32, #tpu.memory_space<vmem>>, vector<64x256xf32>
    %cst = arith.constant dense<0.000000e+00> : vector<4x256xf32>
    %3 = tpu.matmul %1, %2, %cst {dimension_numbers = #tpu.dot_dimension_numbers<[1], [0], [0], [1], [0, 0, 1, 1], [], []>} : vector<4x64xf32>, vector<64x256xf32>, vector<4x256xf32> -> vector<4x256xf32>
    %cst_4 = arith.constant 0.000000e+00 : f32
    %4 = vector.broadcast %cst_4 : f32 to vector<8x17xf32>
    %c0_5 = arith.constant 0 : index
    %c0_6 = arith.constant 0 : index
    %5 = vector.load %arg12[%c0_5, %c0_6] : memref<8x290xf32, #tpu.memory_space<vmem>>, vector<8x17xf32>
    tpu.vector_store %arg12[%c0_5, %c0_6], %4 {strides = array<i32>} : memref<8x290xf32, #tpu.memory_space<vmem>>, vector<8x17xf32>,
    %c0_7 = arith.constant 0 : index
    %c273 = arith.constant 273 : index
    %6 = vector.load %arg12[%c0_7, %c273] : memref<8x290xf32, #tpu.memory_space<vmem>>, vector<8x17xf32>
    tpu.vector_store %arg12[%c0_7, %c273], %4 {strides = array<i32>} : memref<8x290xf32, #tpu.memory_space<vmem>>, vector<8x17xf32>,
    %c0_8 = arith.constant 0 : index
    %c0_9 = arith.constant 0 : index
    %c0_10 = arith.constant 0 : index
    %7 = vector.load %arg2[%c0_8, %c0_9, %c0_10] : memref<1x4x256xf32, #tpu.memory_space<vmem>>, vector<1x4x256xf32>
    %8 = vector.shape_cast %7 : vector<1x4x256xf32> to vector<4x256xf32>
    %c0_11 = arith.constant 0 : index
    %c17 = arith.constant 17 : index
    %9 = vector.load %arg12[%c0_11, %c17] : memref<8x290xf32, #tpu.memory_space<vmem>>, vector<4x256xf32>
    tpu.vector_store %arg12[%c0_11, %c17], %8 {strides = array<i32>} : memref<8x290xf32, #tpu.memory_space<vmem>>, vector<4x256xf32>,
    %c4 = arith.constant 4 : index
    %c17_12 = arith.constant 17 : index
    %10 = vector.load %arg12[%c4, %c17_12] : memref<8x290xf32, #tpu.memory_space<vmem>>, vector<4x256xf32>
    tpu.vector_store %arg12[%c4, %c17_12], %3 {strides = array<i32>} : memref<8x290xf32, #tpu.memory_space<vmem>>, vector<4x256xf32>,
    %c0_13 = arith.constant 0 : index
    %c0_14 = arith.constant 0 : index
    %11 = vector.load %arg12[%c0_13, %c0_14] : memref<8x290xf32, #tpu.memory_space<vmem>>, vector<8x256xf32>
    %c0_15 = arith.constant 0 : index
    %c0_16 = arith.constant 0 : index
    %12 = vector.load %arg4[%c0_15, %c0_16] : memref<2x256xf32, #tpu.memory_space<vmem>>, vector<1x256xf32>
    %13 = vector.broadcast %12 : vector<1x256xf32> to vector<8x256xf32>
    %14 = arith.mulf %11, %13 : vector<8x256xf32>
    %c0_17 = arith.constant 0 : index
    %c0_18 = arith.constant 0 : index
    %15 = vector.load %arg14[%c0_17, %c0_18] : memref<72x256xf32, #tpu.memory_space<vmem>>, vector<8x256xf32>
    tpu.vector_store %arg14[%c0_17, %c0_18], %14 {strides = array<i32>} : memref<72x256xf32, #tpu.memory_space<vmem>>, vector<8x256xf32>,
    %c0_19 = arith.constant 0 : index
    %c1 = arith.constant 1 : index
    %16 = vector.load %arg12[%c0_19, %c1] : memref<8x290xf32, #tpu.memory_space<vmem>>, vector<8x256xf32>
    %c8 = arith.constant 8 : index
    %c0_20 = arith.constant 0 : index
    %17 = vector.load %arg14[%c8, %c0_20] : memref<72x256xf32, #tpu.memory_space<vmem>>, vector<8x256xf32>
    tpu.vector_store %arg14[%c8, %c0_20], %16 {strides = array<i32>} : memref<72x256xf32, #tpu.memory_space<vmem>>, vector<8x256xf32>,
    %c0_21 = arith.constant 0 : index
    %c2 = arith.constant 2 : index
    %18 = vector.load %arg12[%c0_21, %c2] : memref<8x290xf32, #tpu.memory_space<vmem>>, vector<8x256xf32>
    %c1_22 = arith.constant 1 : index
    %c0_23 = arith.constant 0 : index
    %19 = vector.load %arg4[%c1_22, %c0_23] : memref<2x256xf32, #tpu.memory_space<vmem>>, vector<1x256xf32>
    %20 = vector.broadcast %19 : vector<1x256xf32> to vector<8x256xf32>
    %21 = arith.mulf %18, %20 : vector<8x256xf32>
    %c16 = arith.constant 16 : index
    %c0_24 = arith.constant 0 : index
    %22 = vector.load %arg14[%c16, %c0_24] : memref<72x256xf32, #tpu.memory_space<vmem>>, vector<8x256xf32>
    tpu.vector_store %arg14[%c16, %c0_24], %21 {strides = array<i32>} : memref<72x256xf32, #tpu.memory_space<vmem>>, vector<8x256xf32>,
    %c0_25 = arith.constant 0 : index
    %c16_26 = arith.constant 16 : index
    %23 = vector.load %arg12[%c0_25, %c16_26] : memref<8x290xf32, #tpu.memory_space<vmem>>, vector<8x256xf32>
    %c0_27 = arith.constant 0 : index
    %c0_28 = arith.constant 0 : index
    %24 = vector.load %arg4[%c0_27, %c0_28] : memref<2x256xf32, #tpu.memory_space<vmem>>, vector<1x256xf32>
    %25 = vector.broadcast %24 : vector<1x256xf32> to vector<8x256xf32>
    %26 = arith.mulf %23, %25 : vector<8x256xf32>
    %c24 = arith.constant 24 : index
    %c0_29 = arith.constant 0 : index
    %27 = vector.load %arg14[%c24, %c0_29] : memref<72x256xf32, #tpu.memory_space<vmem>>, vector<8x256xf32>
    tpu.vector_store %arg14[%c24, %c0_29], %26 {strides = array<i32>} : memref<72x256xf32, #tpu.memory_space<vmem>>, vector<8x256xf32>,
    %c0_30 = arith.constant 0 : index
    %c17_31 = arith.constant 17 : index
    %28 = vector.load %arg12[%c0_30, %c17_31] : memref<8x290xf32, #tpu.memory_space<vmem>>, vector<8x256xf32>
    %c32 = arith.constant 32 : index
    %c0_32 = arith.constant 0 : index
    %29 = vector.load %arg14[%c32, %c0_32] : memref<72x256xf32, #tpu.memory_space<vmem>>, vector<8x256xf32>
    tpu.vector_store %arg14[%c32, %c0_32], %28 {strides = array<i32>} : memref<72x256xf32, #tpu.memory_space<vmem>>, vector<8x256xf32>,
    %c0_33 = arith.constant 0 : index
    %c18 = arith.constant 18 : index
    %30 = vector.load %arg12[%c0_33, %c18] : memref<8x290xf32, #tpu.memory_space<vmem>>, vector<8x256xf32>
    %c1_34 = arith.constant 1 : index
    %c0_35 = arith.constant 0 : index
    %31 = vector.load %arg4[%c1_34, %c0_35] : memref<2x256xf32, #tpu.memory_space<vmem>>, vector<1x256xf32>
    %32 = vector.broadcast %31 : vector<1x256xf32> to vector<8x256xf32>
    %33 = arith.mulf %30, %32 : vector<8x256xf32>
    %c40 = arith.constant 40 : index
    %c0_36 = arith.constant 0 : index
    %34 = vector.load %arg14[%c40, %c0_36] : memref<72x256xf32, #tpu.memory_space<vmem>>, vector<8x256xf32>
    tpu.vector_store %arg14[%c40, %c0_36], %33 {strides = array<i32>} : memref<72x256xf32, #tpu.memory_space<vmem>>, vector<8x256xf32>,
    %c0_37 = arith.constant 0 : index
    %c32_38 = arith.constant 32 : index
    %35 = vector.load %arg12[%c0_37, %c32_38] : memref<8x290xf32, #tpu.memory_space<vmem>>, vector<8x256xf32>
    %c0_39 = arith.constant 0 : index
    %c0_40 = arith.constant 0 : index
    %36 = vector.load %arg4[%c0_39, %c0_40] : memref<2x256xf32, #tpu.memory_space<vmem>>, vector<1x256xf32>
    %37 = vector.broadcast %36 : vector<1x256xf32> to vector<8x256xf32>
    %38 = arith.mulf %35, %37 : vector<8x256xf32>
    %c48 = arith.constant 48 : index
    %c0_41 = arith.constant 0 : index
    %39 = vector.load %arg14[%c48, %c0_41] : memref<72x256xf32, #tpu.memory_space<vmem>>, vector<8x256xf32>
    tpu.vector_store %arg14[%c48, %c0_41], %38 {strides = array<i32>} : memref<72x256xf32, #tpu.memory_space<vmem>>, vector<8x256xf32>,
    %c0_42 = arith.constant 0 : index
    %c33 = arith.constant 33 : index
    %40 = vector.load %arg12[%c0_42, %c33] : memref<8x290xf32, #tpu.memory_space<vmem>>, vector<8x256xf32>
    %c56 = arith.constant 56 : index
    %c0_43 = arith.constant 0 : index
    %41 = vector.load %arg14[%c56, %c0_43] : memref<72x256xf32, #tpu.memory_space<vmem>>, vector<8x256xf32>
    tpu.vector_store %arg14[%c56, %c0_43], %40 {strides = array<i32>} : memref<72x256xf32, #tpu.memory_space<vmem>>, vector<8x256xf32>,
    %c0_44 = arith.constant 0 : index
    %c34 = arith.constant 34 : index
    %42 = vector.load %arg12[%c0_44, %c34] : memref<8x290xf32, #tpu.memory_space<vmem>>, vector<8x256xf32>
    %c1_45 = arith.constant 1 : index
    %c0_46 = arith.constant 0 : index
    %43 = vector.load %arg4[%c1_45, %c0_46] : memref<2x256xf32, #tpu.memory_space<vmem>>, vector<1x256xf32>
    %44 = vector.broadcast %43 : vector<1x256xf32> to vector<8x256xf32>
    %45 = arith.mulf %42, %44 : vector<8x256xf32>
    %c64 = arith.constant 64 : index
    %c0_47 = arith.constant 0 : index
    %46 = vector.load %arg14[%c64, %c0_47] : memref<72x256xf32, #tpu.memory_space<vmem>>, vector<8x256xf32>
    tpu.vector_store %arg14[%c64, %c0_47], %45 {strides = array<i32>} : memref<72x256xf32, #tpu.memory_space<vmem>>, vector<8x256xf32>,
    %c0_48 = arith.constant 0 : index
    %c0_49 = arith.constant 0 : index
    %47 = vector.load %arg5[%c0_48, %c0_49] : memref<4x72xf32, #tpu.memory_space<vmem>>, vector<4x72xf32>
    %c0_50 = arith.constant 0 : index
    %c0_51 = arith.constant 0 : index
    %48 = vector.load %arg14[%c0_50, %c0_51] : memref<72x256xf32, #tpu.memory_space<vmem>>, vector<72x256xf32>
    %cst_52 = arith.constant dense<0.000000e+00> : vector<4x256xf32>
    %49 = tpu.matmul %47, %48, %cst_52 {dimension_numbers = #tpu.dot_dimension_numbers<[1], [0], [0], [1], [0, 0, 1, 1], [], []>} : vector<4x72xf32>, vector<72x256xf32>, vector<4x256xf32> -> vector<4x256xf32>
    %c0_53 = arith.constant 0 : index
    %c0_54 = arith.constant 0 : index
    %50 = vector.load %arg6[%c0_53, %c0_54] : memref<4x1xf32, #tpu.memory_space<vmem>>, vector<4x1xf32>
    %51 = vector.broadcast %50 : vector<4x1xf32> to vector<4x256xf32>
    %52 = arith.mulf %49, %51 : vector<4x256xf32>
    %c0_55 = arith.constant 0 : index
    %c0_56 = arith.constant 0 : index
    %53 = vector.load %arg7[%c0_55, %c0_56] : memref<4x1xf32, #tpu.memory_space<vmem>>, vector<4x1xf32>
    %54 = vector.broadcast %53 : vector<4x1xf32> to vector<4x256xf32>
    %55 = arith.addf %52, %54 : vector<4x256xf32>
    %cst_57 = arith.constant 0.000000e+00 : f32
    %56 = vector.broadcast %cst_57 : f32 to vector<4x256xf32>
    %57 = arith.maximumf %55, %56 : vector<4x256xf32>
    %cst_58 = arith.constant 0.000000e+00 : f32
    %58 = vector.broadcast %cst_58 : f32 to vector<4x17xf32>
    %c0_59 = arith.constant 0 : index
    %c0_60 = arith.constant 0 : index
    %59 = vector.load %arg13[%c0_59, %c0_60] : memref<4x290xf32, #tpu.memory_space<vmem>>, vector<4x17xf32>
    tpu.vector_store %arg13[%c0_59, %c0_60], %58 {strides = array<i32>} : memref<4x290xf32, #tpu.memory_space<vmem>>, vector<4x17xf32>,
    %c0_61 = arith.constant 0 : index
    %c273_62 = arith.constant 273 : index
    %60 = vector.load %arg13[%c0_61, %c273_62] : memref<4x290xf32, #tpu.memory_space<vmem>>, vector<4x17xf32>
    tpu.vector_store %arg13[%c0_61, %c273_62], %58 {strides = array<i32>} : memref<4x290xf32, #tpu.memory_space<vmem>>, vector<4x17xf32>,
    %c0_63 = arith.constant 0 : index
    %c17_64 = arith.constant 17 : index
    %61 = vector.load %arg13[%c0_63, %c17_64] : memref<4x290xf32, #tpu.memory_space<vmem>>, vector<4x256xf32>
    tpu.vector_store %arg13[%c0_63, %c17_64], %57 {strides = array<i32>} : memref<4x290xf32, #tpu.memory_space<vmem>>, vector<4x256xf32>,
    %c0_65 = arith.constant 0 : index
    %c0_66 = arith.constant 0 : index
    %62 = vector.load %arg13[%c0_65, %c0_66] : memref<4x290xf32, #tpu.memory_space<vmem>>, vector<4x256xf32>
    %c0_67 = arith.constant 0 : index
    %c0_68 = arith.constant 0 : index
    %63 = vector.load %arg4[%c0_67, %c0_68] : memref<2x256xf32, #tpu.memory_space<vmem>>, vector<1x256xf32>
    %64 = vector.broadcast %63 : vector<1x256xf32> to vector<4x256xf32>
    %65 = arith.mulf %62, %64 : vector<4x256xf32>
    %c0_69 = arith.constant 0 : index
    %c0_70 = arith.constant 0 : index
    %66 = vector.load %arg15[%c0_69, %c0_70] : memref<36x256xf32, #tpu.memory_space<vmem>>, vector<4x256xf32>
    tpu.vector_store %arg15[%c0_69, %c0_70], %65 {strides = array<i32>} : memref<36x256xf32, #tpu.memory_space<vmem>>, vector<4x256xf32>,
    %c0_71 = arith.constant 0 : index
    %c1_72 = arith.constant 1 : index
    %67 = vector.load %arg13[%c0_71, %c1_72] : memref<4x290xf32, #tpu.memory_space<vmem>>, vector<4x256xf32>
    %c4_73 = arith.constant 4 : index
    %c0_74 = arith.constant 0 : index
    %68 = vector.load %arg15[%c4_73, %c0_74] : memref<36x256xf32, #tpu.memory_space<vmem>>, vector<4x256xf32>
    tpu.vector_store %arg15[%c4_73, %c0_74], %67 {strides = array<i32>} : memref<36x256xf32, #tpu.memory_space<vmem>>, vector<4x256xf32>,
    %c0_75 = arith.constant 0 : index
    %c2_76 = arith.constant 2 : index
    %69 = vector.load %arg13[%c0_75, %c2_76] : memref<4x290xf32, #tpu.memory_space<vmem>>, vector<4x256xf32>
    %c1_77 = arith.constant 1 : index
    %c0_78 = arith.constant 0 : index
    %70 = vector.load %arg4[%c1_77, %c0_78] : memref<2x256xf32, #tpu.memory_space<vmem>>, vector<1x256xf32>
    %71 = vector.broadcast %70 : vector<1x256xf32> to vector<4x256xf32>
    %72 = arith.mulf %69, %71 : vector<4x256xf32>
    %c8_79 = arith.constant 8 : index
    %c0_80 = arith.constant 0 : index
    %73 = vector.load %arg15[%c8_79, %c0_80] : memref<36x256xf32, #tpu.memory_space<vmem>>, vector<4x256xf32>
    tpu.vector_store %arg15[%c8_79, %c0_80], %72 {strides = array<i32>} : memref<36x256xf32, #tpu.memory_space<vmem>>, vector<4x256xf32>,
    %c0_81 = arith.constant 0 : index
    %c16_82 = arith.constant 16 : index
    %74 = vector.load %arg13[%c0_81, %c16_82] : memref<4x290xf32, #tpu.memory_space<vmem>>, vector<4x256xf32>
    %c0_83 = arith.constant 0 : index
    %c0_84 = arith.constant 0 : index
    %75 = vector.load %arg4[%c0_83, %c0_84] : memref<2x256xf32, #tpu.memory_space<vmem>>, vector<1x256xf32>
    %76 = vector.broadcast %75 : vector<1x256xf32> to vector<4x256xf32>
    %77 = arith.mulf %74, %76 : vector<4x256xf32>
    %c12 = arith.constant 12 : index
    %c0_85 = arith.constant 0 : index
    %78 = vector.load %arg15[%c12, %c0_85] : memref<36x256xf32, #tpu.memory_space<vmem>>, vector<4x256xf32>
    tpu.vector_store %arg15[%c12, %c0_85], %77 {strides = array<i32>} : memref<36x256xf32, #tpu.memory_space<vmem>>, vector<4x256xf32>,
    %c0_86 = arith.constant 0 : index
    %c17_87 = arith.constant 17 : index
    %79 = vector.load %arg13[%c0_86, %c17_87] : memref<4x290xf32, #tpu.memory_space<vmem>>, vector<4x256xf32>
    %c16_88 = arith.constant 16 : index
    %c0_89 = arith.constant 0 : index
    %80 = vector.load %arg15[%c16_88, %c0_89] : memref<36x256xf32, #tpu.memory_space<vmem>>, vector<4x256xf32>
    tpu.vector_store %arg15[%c16_88, %c0_89], %79 {strides = array<i32>} : memref<36x256xf32, #tpu.memory_space<vmem>>, vector<4x256xf32>,
    %c0_90 = arith.constant 0 : index
    %c18_91 = arith.constant 18 : index
    %81 = vector.load %arg13[%c0_90, %c18_91] : memref<4x290xf32, #tpu.memory_space<vmem>>, vector<4x256xf32>
    %c1_92 = arith.constant 1 : index
    %c0_93 = arith.constant 0 : index
    %82 = vector.load %arg4[%c1_92, %c0_93] : memref<2x256xf32, #tpu.memory_space<vmem>>, vector<1x256xf32>
    %83 = vector.broadcast %82 : vector<1x256xf32> to vector<4x256xf32>
    %84 = arith.mulf %81, %83 : vector<4x256xf32>
    %c20 = arith.constant 20 : index
    %c0_94 = arith.constant 0 : index
    %85 = vector.load %arg15[%c20, %c0_94] : memref<36x256xf32, #tpu.memory_space<vmem>>, vector<4x256xf32>
    tpu.vector_store %arg15[%c20, %c0_94], %84 {strides = array<i32>} : memref<36x256xf32, #tpu.memory_space<vmem>>, vector<4x256xf32>,
    %c0_95 = arith.constant 0 : index
    %c32_96 = arith.constant 32 : index
    %86 = vector.load %arg13[%c0_95, %c32_96] : memref<4x290xf32, #tpu.memory_space<vmem>>, vector<4x256xf32>
    %c0_97 = arith.constant 0 : index
    %c0_98 = arith.constant 0 : index
    %87 = vector.load %arg4[%c0_97, %c0_98] : memref<2x256xf32, #tpu.memory_space<vmem>>, vector<1x256xf32>
    %88 = vector.broadcast %87 : vector<1x256xf32> to vector<4x256xf32>
    %89 = arith.mulf %86, %88 : vector<4x256xf32>
    %c24_99 = arith.constant 24 : index
    %c0_100 = arith.constant 0 : index
    %90 = vector.load %arg15[%c24_99, %c0_100] : memref<36x256xf32, #tpu.memory_space<vmem>>, vector<4x256xf32>
    tpu.vector_store %arg15[%c24_99, %c0_100], %89 {strides = array<i32>} : memref<36x256xf32, #tpu.memory_space<vmem>>, vector<4x256xf32>,
    %c0_101 = arith.constant 0 : index
    %c33_102 = arith.constant 33 : index
    %91 = vector.load %arg13[%c0_101, %c33_102] : memref<4x290xf32, #tpu.memory_space<vmem>>, vector<4x256xf32>
    %c28 = arith.constant 28 : index
    %c0_103 = arith.constant 0 : index
    %92 = vector.load %arg15[%c28, %c0_103] : memref<36x256xf32, #tpu.memory_space<vmem>>, vector<4x256xf32>
    tpu.vector_store %arg15[%c28, %c0_103], %91 {strides = array<i32>} : memref<36x256xf32, #tpu.memory_space<vmem>>, vector<4x256xf32>,
    %c0_104 = arith.constant 0 : index
    %c34_105 = arith.constant 34 : index
    %93 = vector.load %arg13[%c0_104, %c34_105] : memref<4x290xf32, #tpu.memory_space<vmem>>, vector<4x256xf32>
    %c1_106 = arith.constant 1 : index
    %c0_107 = arith.constant 0 : index
    %94 = vector.load %arg4[%c1_106, %c0_107] : memref<2x256xf32, #tpu.memory_space<vmem>>, vector<1x256xf32>
    %95 = vector.broadcast %94 : vector<1x256xf32> to vector<4x256xf32>
    %96 = arith.mulf %93, %95 : vector<4x256xf32>
    %c32_108 = arith.constant 32 : index
    %c0_109 = arith.constant 0 : index
    %97 = vector.load %arg15[%c32_108, %c0_109] : memref<36x256xf32, #tpu.memory_space<vmem>>, vector<4x256xf32>
    tpu.vector_store %arg15[%c32_108, %c0_109], %96 {strides = array<i32>} : memref<36x256xf32, #tpu.memory_space<vmem>>, vector<4x256xf32>,
    %c0_110 = arith.constant 0 : index
    %c0_111 = arith.constant 0 : index
    %98 = vector.load %arg8[%c0_110, %c0_111] : memref<4x36xf32, #tpu.memory_space<vmem>>, vector<4x36xf32>
    %c0_112 = arith.constant 0 : index
    %c0_113 = arith.constant 0 : index
    %99 = vector.load %arg15[%c0_112, %c0_113] : memref<36x256xf32, #tpu.memory_space<vmem>>, vector<36x256xf32>
    %cst_114 = arith.constant dense<0.000000e+00> : vector<4x256xf32>
    %100 = tpu.matmul %98, %99, %cst_114 {dimension_numbers = #tpu.dot_dimension_numbers<[1], [0], [0], [1], [0, 0, 1, 1], [], []>} : vector<4x36xf32>, vector<36x256xf32>, vector<4x256xf32> -> vector<4x256xf32>
    %c0_115 = arith.constant 0 : index
    %c0_116 = arith.constant 0 : index
    %101 = vector.load %arg9[%c0_115, %c0_116] : memref<4x1xf32, #tpu.memory_space<vmem>>, vector<4x1xf32>
    %102 = vector.broadcast %101 : vector<4x1xf32> to vector<4x256xf32>
    %103 = arith.mulf %100, %102 : vector<4x256xf32>
    %c0_117 = arith.constant 0 : index
    %c0_118 = arith.constant 0 : index
    %104 = vector.load %arg10[%c0_117, %c0_118] : memref<4x1xf32, #tpu.memory_space<vmem>>, vector<4x1xf32>
    %105 = vector.broadcast %104 : vector<4x1xf32> to vector<4x256xf32>
    %106 = arith.addf %103, %105 : vector<4x256xf32>
    %cst_119 = arith.constant 0.000000e+00 : f32
    %107 = vector.broadcast %cst_119 : f32 to vector<4x256xf32>
    %108 = arith.maximumf %106, %107 : vector<4x256xf32>
    %c0_120 = arith.constant 0 : index
    %c0_121 = arith.constant 0 : index
    %c0_122 = arith.constant 0 : index
    %109 = vector.load %arg11[%c0_120, %c0_121, %c0_122] : memref<1x4x256xf32, #tpu.memory_space<vmem>>, vector<1x4x256xf32>
    %110 = vector.shape_cast %109 : vector<1x4x256xf32> to vector<4x256xf32>
    %111 = vector.shape_cast %108 : vector<4x256xf32> to vector<1x4x256xf32>
    tpu.vector_store %arg11[%c0_120, %c0_121, %c0_122], %111 {strides = array<i32>} : memref<1x4x256xf32, #tpu.memory_space<vmem>>, vector<1x4x256xf32>,
    return
  }
  func.func @transform_0(%arg0: i32) -> (i32, i32, i32) {
    %c0_i32 = arith.constant 0 : i32
    %c0_i32_0 = arith.constant 0 : i32
    %c0_i32_1 = arith.constant 0 : i32
    return %arg0, %c0_i32, %c0_i32_0 : i32, i32, i32
  }
  func.func @transform_1(%arg0: i32) -> (i32, i32, i32) {
    %c0_i32 = arith.constant 0 : i32
    %c0_i32_0 = arith.constant 0 : i32
    %c0_i32_1 = arith.constant 0 : i32
    return %arg0, %c0_i32, %c0_i32_0 : i32, i32, i32
  }
  func.func @transform_2(%arg0: i32) -> (i32, i32) {
    %c0_i32 = arith.constant 0 : i32
    %c0_i32_0 = arith.constant 0 : i32
    %c0_i32_1 = arith.constant 0 : i32
    return %c0_i32, %c0_i32_0 : i32, i32
  }
  func.func @transform_3(%arg0: i32) -> (i32, i32) {
    %c0_i32 = arith.constant 0 : i32
    %c0_i32_0 = arith.constant 0 : i32
    %c0_i32_1 = arith.constant 0 : i32
    return %c0_i32, %c0_i32_0 : i32, i32
  }
  func.func @transform_4(%arg0: i32) -> (i32, i32) {
    %c0_i32 = arith.constant 0 : i32
    %c0_i32_0 = arith.constant 0 : i32
    %c0_i32_1 = arith.constant 0 : i32
    return %c0_i32, %c0_i32_0 : i32, i32
  }
  func.func @transform_5(%arg0: i32) -> (i32, i32) {
    %c0_i32 = arith.constant 0 : i32
    %c0_i32_0 = arith.constant 0 : i32
    %c0_i32_1 = arith.constant 0 : i32
    return %c0_i32, %c0_i32_0 : i32, i32
  }
  func.func @transform_6(%arg0: i32) -> (i32, i32) {
    %c0_i32 = arith.constant 0 : i32
    %c0_i32_0 = arith.constant 0 : i32
    %c0_i32_1 = arith.constant 0 : i32
    return %c0_i32, %c0_i32_0 : i32, i32
  }
  func.func @transform_7(%arg0: i32) -> (i32, i32) {
    %c0_i32 = arith.constant 0 : i32
    %c0_i32_0 = arith.constant 0 : i32
    %c0_i32_1 = arith.constant 0 : i32
    return %c0_i32, %c0_i32_0 : i32, i32
  }
  func.func @transform_8(%arg0: i32) -> (i32, i32) {
    %c0_i32 = arith.constant 0 : i32
    %c0_i32_0 = arith.constant 0 : i32
    %c0_i32_1 = arith.constant 0 : i32
    return %c0_i32, %c0_i32_0 : i32, i32
  }
  func.func @transform_9(%arg0: i32) -> (i32, i32) {
    %c0_i32 = arith.constant 0 : i32
    %c0_i32_0 = arith.constant 0 : i32
    %c0_i32_1 = arith.constant 0 : i32
    return %c0_i32, %c0_i32_0 : i32, i32
  }
  func.func @transform_10(%arg0: i32) -> (i32, i32, i32) {
    %c0_i32 = arith.constant 0 : i32
    %c0_i32_0 = arith.constant 0 : i32
    %c0_i32_1 = arith.constant 0 : i32
    return %arg0, %c0_i32, %c0_i32_0 : i32, i32, i32
  }
}

</mosaic_0001>

<bundles_post_ra>
// kernel: up_forward.1
= control target key start
LH: loop header
LB: loop body
LE: loop exit
PB: predicated region body
PF: predicated region fallthrough
CT: control target
= control target key end

     0   :  { %s1562_s13 = smov 0   ;;  %s1869_s0 = inlined_call_operand.vmem [shape: f32[2,4,64], index: 0, kind: input, shape index: {}]   ;;  %s1870_s1 = inlined_call_operand.vmem [shape: f32[2,4,256], index: 1, kind: input, shape index: {}]   ;;  %s1871_s2 = inlined_call_operand.vmem [shape: f32[64,256], index: 2, kind: input, shape index: {}]   ;;  %s1872_s3 = inlined_call_operand.vmem [shape: f32[2,256], index: 3, kind: input, shape index: {}]   ;;  %s1873_s4 = inlined_call_operand.vmem [shape: f32[4,72], index: 4, kind: input, shape index: {}]   ;;  %s1874_s5 = inlined_call_operand.vmem [shape: f32[4,1], index: 5, kind: input, shape index: {}]   ;;  %s1875_s6 = inlined_call_operand.vmem [shape: f32[4,1], index: 6, kind: input, shape index: {}]   ;;  %s1876_s7 = inlined_call_operand.vmem [shape: f32[4,36], index: 7, kind: input, shape index: {}]   ;;  %s1877_s8 = inlined_call_operand.vmem [shape: f32[4,1], index: 8, kind: input, shape index: {}]   ;;  %s1878_s9 = inlined_call_operand.vmem [shape: f32[4,1], index: 9, kind: input, shape index: {}]   ;;  %s1879_s10 = inlined_call_operand.vmem [shape: f32[2,4,256], index: 10, kind: output, shape index: {}]  }
   0x1 LB: > { %s1352_s14 = sadd.s32 4294967295, %s1489_s13   ;;  %p1356_p0 = scmp.ge.s32.totalorder %s1489_s13, 1  ;;  %s1489_s13 = sphi %s1562_s13, %s20_s13  }
   0x2   : > { %p321_p1 = scmp.lt.s32.totalorder %s1489_s13, 3 }
   0x4   : > { %p322_p2 = pnand %p1356_p0, %p321_p1 }
   0x5   : > { %v379_v0 = vld [vmem:[%s1871_s2 + $0x8] sm:$0xff] (!%p322_p2)  ;;  %v381_v1 = vld [vmem:[%s1871_s2 + $0x18] sm:$0xff] (!%p322_p2)  ;;  %v378_v2 = vld [vmem:[%s1871_s2] sm:$0xff] (!%p322_p2)  ;;  %p1579_p3 = scmp.lt.s32.totalorder (!%p322_p2), %s1352_s14, 1  ;;  %v510_v3 = vlaneseq (!%p322_p2)  ;;  %v1491_v8 = vmov (!%p322_p2), 0.0   ;;  %s1492_s30 = smov (!%p322_p2), 17  }
   0x6   : > { %325 = sbr.rel (%p322_p2) target bundleno = 1253 (0x4e5), region = 60  ;;  %v1377_v4 = vpack.c.bf16 (!%p322_p2), %v381_v1, %v379_v0  ;;  %v380_v5 = vld [vmem:[%s1871_s2 + $0x10] sm:$0xff] (!%p322_p2)  ;;  %v383_v6 = vld [vmem:[%s1871_s2 + $0x28] sm:$0xff] (!%p322_p2)  ;;  %v385_v7 = vld [vmem:[%s1871_s2 + $0x38] sm:$0xff] (!%p322_p2)  ;;  %462 = vmatprep.mubr.f32.mxu0 (!%p322_p2), %v1491_v8  ;;  %874 = vmatprep.mubr.f32.mxu1 (!%p322_p2), %v1491_v8  ;;  %s1493_s26 = smov (!%p322_p2), 2   ;;  %vm394_vm0 = vcmask (!%p322_p2), 523264  }
   0x7   : > { %v1379_v9 = vpack.c.bf16 (!%p322_p2), %v380_v5, %v378_v2  ;;  %v1381_v10 = vpack.c.bf16 (!%p322_p2), %v385_v7, %v383_v6  ;;  %v382_v11 = vld [vmem:[%s1871_s2 + $0x20] sm:$0xff] (!%p322_p2)  ;;  %v384_v12 = vld [vmem:[%s1871_s2 + $0x30] sm:$0xff] (!%p322_p2)  ;;  %v387_v13 = vld [vmem:[%s1871_s2 + $0x48] sm:$0xff] (!%p322_p2)  ;;  %v1610_v15 = vshrl.u32 (!%p322_p2), %v510_v3, 7  ;;  %s1494_s27 = smov (!%p322_p2), 16   ;;  %s1495_s11 = smov (!%p322_p2), 18  }
   0x8   : > { %1378 = vmatprep.subr.bf16.mxu0 (!%p322_p2), %v1377_v4  ;;  %v389_v14 = vld [vmem:[%s1871_s2 + $0x58] sm:$0xff] (!%p322_p2)  ;;  %v1383_v16 = vpack.c.bf16 (!%p322_p2), %v384_v12, %v382_v11  ;;  %v386_v18 = vld [vmem:[%s1871_s2 + $0x40] sm:$0xff] (!%p322_p2)  ;;  %v388_v19 = vld [vmem:[%s1871_s2 + $0x50] sm:$0xff] (!%p322_p2)  ;;  %s1496_s16 = smov (!%p322_p2), 32   ;;  %vm469_vm1 = vcmask (!%p322_p2), 138240   ;;  %vm484_vm2 = vcmask (!%p322_p2), 1043592  }
   0x9   : > { %1380 = vmatpush1.bf16.msra.mxu0 (!%p322_p2), %v1379_v9  ;;  %v1385_v17 = vpack.c.bf16 (!%p322_p2), %v389_v14, %v387_v13  ;;  %v391_v20 = vld [vmem:[%s1871_s2 + $0x68] sm:$0xff] (!%p322_p2)  ;;  %v393_v21 = vld [vmem:[%s1871_s2 + $0x78] sm:$0xff] (!%p322_p2)  ;;  %v1632_v24 = vsub.s32 (!%p322_p2), 0, %v1610_v15  ;;  %v1387_v25 = vpack.c.bf16 (!%p322_p2), %v388_v19, %v386_v18  ;;  %v1363_v26 = vld [vmem:[%s1872_s3 + $0x1] ss:$2 sm:$0x3] (!%p322_p2) }
   0xa   : > { %1382 = vmatprep.subr.bf16.mxu0 (!%p322_p2), %v1381_v10  ;;  %v1389_v27 = vpack.c.bf16 (!%p322_p2), %v393_v21, %v391_v20  ;;  %v390_v28 = vld [vmem:[%s1871_s2 + $0x60] sm:$0xff] (!%p322_p2)  ;;  %v392_v29 = vld [vmem:[%s1871_s2 + $0x70] sm:$0xff] (!%p322_p2)  ;;  %vm471_vm3 = vcmask (!%p322_p2), 277640   ;;  %470 = vst.msk [vmem:[#allocation2] sm:$0xff] (!%p322_p2), %vm469_vm1, %v1491_v8  ;;  %vm487_vm4 = vcmask (!%p322_p2), 134144   ;;  %v1681_v47 = vsub.s32 (!%p322_p2), 1, %v1610_v15 }
   0xb   : > { %v552_v30 = vrot.slane (!%p322_p2), %v1363_v26, %v1632_v24  ;;  %v1391_v31 = vpack.c.bf16 (!%p322_p2), %v392_v29, %v390_v28  ;;  %v588_v32 = vld [vmem:[%s1872_s3] ss:$2 sm:$0x3] (!%p322_p2)  ;;  %v1364_v35 = vld [vmem:[%s1872_s3 + $0x1] ss:$2 sm:$0x3] (!%p322_p2) }
   0xc   : > { %v593_v33 = vrot.slane (!%p322_p2), %v588_v32, %v1632_v24  ;;  %v653_v36 = vrot.slane (!%p322_p2), %v1364_v35, %v1632_v24  ;;  %v689_v37 = vld [vmem:[%s1872_s3] ss:$2 sm:$0x3] (!%p322_p2)  ;;  %v1365_v39 = vld [vmem:[%s1872_s3 + $0x1] ss:$2 sm:$0x3] (!%p322_p2)  ;;  %v556_v49 = vrot.slane (!%p322_p2), %v1363_v26, %v1681_v47  ;;  %v597_v50 = vrot.slane (!%p322_p2), %v588_v32, %v1681_v47 }
   0xd   : > { %s1896_s14 = smov (!%p1579_p3, %s1352_s14), 1  ;;  %1384 = vmatpush1.bf16.msra.mxu0 %v1383_v16  ;;  %v694_v38 = vrot.slane %v689_v37, %v1632_v24  ;;  %v754_v40 = vrot.slane %v1365_v39, %v1632_v24  ;;  %472 = vst.msk [vmem:[#allocation2 + $0x10] sm:$0xff] %vm471_vm3, %v1491_v8  ;;  %v657_v51 = vrot.slane %v1364_v35, %v1681_v47  ;;  %vm501_vm5 = vcmask 1047692   ;;  %s1498_s21 = smov 111   ;;  %v889_v35 = vld [vmem:[%s1875_s6] sm:$0xf] }
   0xe   : > { %s1880_s18 = sshll.u32 %s1896_s14, 3  ;;  %1386 = vmatprep.subr.bf16.mxu0 %v1385_v17  ;;  %s1357_s20 = sshll.u32 %s1896_s14, 2  ;;  %899 = vst.msk [vmem:[#allocation3] sm:$0xf] %vm487_vm4, %v1491_v8  ;;  %v698_v52 = vrot.slane %v689_v37, %v1681_v47  ;;  %v758_v53 = vrot.slane %v1365_v39, %v1681_v47  ;;  %vm504_vm6 = vcmask 138244   ;;  %vm602_vm7 = vcmask 130048  }
   0xf   : > { %s371_s25 = scalar_lea.vmem %s1870_s1, %s1880_s18  ;;  %s1499_s22 = smov 127   ;;  %vm662_vm8 = vcmask 146432   ;;  %vm561_vm9 = vcmask 15360   ;;  %vm703_vm10 = vcmask 261120   ;;  %vm763_vm11 = vcmask 277504  }
  0x10   : > { %v473_v22 = vld [vmem:[%s371_s25] sm:$0xff]  ;;  %s366_s25 = scalar_lea.vmem %s1869_s0, %s1357_s20  ;;  %s1497_s20 = smov 34   ;;  %vm536_vm12 = vcmask 1039360   ;;  %vm1885_vm13 = vcmask 916480   ;;  %vm578_vm14 = vcmask 1031168   ;;  %vm638_vm15 = vcmask 908288  }
  0x11   : > { %476 = vrot.lane.b32.xlu0 %v473_v22, %s1492_s30  ;;  %v475_v23 = vcombine.high %v473_v22, %v473_v22  ;;  %1388 = vmatpush1.bf16.msra.mxu0 %v1387_v25  ;;  %v377_v34 = vld [vmem:[%s366_s25] sm:$0xf]  ;;  %s1883_s23 = smov 112   ;;  %s1881_s24 = smov 110   ;;  %vm739_vm3 = vcmask 777216  }
  0x12   : > { %1390 = vmatprep.subr.bf16.mxu0 %v1389_v27  ;;  %s1502_s25 = smov 126   ;;  %s1503_s28 = smov 95   ;;  %v508_v37 = vld [vmem:[%s1872_s3] ss:$2 sm:$0x3] }
  0x13   : > { %s1504_s29 = smov 96   ;;  %s1506_s12 = smov 94  }
  0x15   : > { %478 = vrot.lane.b32.xlu0 %v475_v23, %s1492_s30  ;;  %1392 = vmatpush1.bf16.msra.mxu0 %v1391_v31  ;;  %v1505_v31 = vmov 0  }
  0x16   : > { %1476 = vset.pattern.permute.xlu1 %v1505_v31  ;;  %1477 = vset.pattern.permute.xlu0 %v1505_v31 }
  0x18   : > { %1362 = vmatmul.mubr.msk.f32.vlgmr.msra.gmra.mrb[0].mxu0 %vm394_vm0, %v377_v34  ;;  %vm679_vm0 = vcmask 900096  }
  0x19   : > { %557 = vrot.lane.b32.xlu0 %v552_v30, %s1493_s26  ;;  %1255 = vmatprep.mubr.f32.mxu0 %v1491_v8 }
  0x1d   : > { %598 = vrot.lane.b32.xlu0 %v593_v33, %s1494_s27  ;;  %v881_v33 = vld [vmem:[%s1874_s5] sm:$0xf] }
  0x21   : > { %658 = vrot.lane.b32.xlu0 %v653_v36, %s1495_s11 }
  0x25   : > { %699 = vrot.lane.b32.xlu0 %v694_v38, %s1496_s16 }
  0x29   : > { %759 = vrot.lane.b32.xlu0 %v754_v40, %s1497_s20  ;;  %v517_v40 = vrot.slane %v508_v37, %v1681_v47 }
  0x83   : > { %v477_v41 = vpop.permute.xlu0 %476 }
  0x84   : > { %485 = vst.msk [vmem:[#allocation2] sm:$0xf] %vm484_vm2, %v477_v41 }
  0x87   : > { %v479_v42 = vpop.permute.xlu0 %478 }
  0x88   : > { %v480_v43 = vsel %vm469_vm1, %v477_v41, %v479_v42  ;;  %488 = vst.msk [vmem:[#allocation2 + $0x10] sm:$0xf] %vm487_vm4, %v479_v42  ;;  %v513_v41 = vrot.slane %v508_v37, %v1632_v24 }
  0x89   : > { %486 = vst [vmem:[#allocation2 + $0x8] sm:$0xf] %v480_v43 }
  0x8b   : > { %v558_v55 = vpop.permute.xlu0 %557 }
  0x8f   : > { %v599_v58 = vpop.permute.xlu0 %598 }
  0x93   : > { %v659_v2 = vpop.permute.xlu0 %658 }
  0x97   : > { %v700_v19 = vpop.permute.xlu0 %699 }
  0x9b   : > { %v760_v27 = vpop.permute.xlu0 %759 }
  0xeb   : > { %v464_v44 = vpop.f32.mrb[0].mxu0 }
  0xec   : > { %v491_v45 = vrot.slane %v464_v44, 4  ;;  %v466_v46 = vpop.f32.mrb[1].mxu0 }
  0xed   : > { %v492_v48 = vrot.slane %v466_v46, 4 }
  0xee   : > { %493 = vrot.lane.b32.xlu1 %v491_v45, %s1492_s30 }
  0xf2   : > { %495 = vrot.lane.b32.xlu1 %v492_v48, %s1492_s30 }
  0xf6   : > { %559 = vrot.lane.b32.xlu1 %v556_v49, %s1493_s26 }
  0xfa   : > { %600 = vrot.lane.b32.xlu1 %v597_v50, %s1494_s27 }
  0xfe   : > { %660 = vrot.lane.b32.xlu1 %v657_v51, %s1495_s11 }
 0x102   : > { %701 = vrot.lane.b32.xlu1 %v698_v52, %s1496_s16 }
 0x106   : > { %761 = vrot.lane.b32.xlu1 %v758_v53, %s1497_s20 }
 0x160   : > { %v494_v54 = vpop.permute.xlu1 %493 }
 0x161   : > { %502 = vst.msk [vmem:[#allocation2] sm:$0xf0] %vm501_vm5, %v494_v54  ;;  %vm720_vm5 = vcmask 785408  }
 0x164   : > { %v496_v56 = vpop.permute.xlu1 %495 }
 0x165   : > { %v497_v57 = vsel %vm469_vm1, %v494_v54, %v496_v56  ;;  %505 = vst.msk [vmem:[#allocation2 + $0x10] sm:$0xf0] %vm504_vm6, %v496_v56  ;;  %vm1886_vm6 = vcmask 769024  }
 0x166   : > { %503 = vst [vmem:[#allocation2 + $0x8] sm:$0xf0] %v497_v57 }
 0x168   : > { %v1695_v59 = vld [vmem:[#allocation2] sm:$0xff]  ;;  %v560_v60 = vpop.permute.xlu1 %559 }
 0x169   : > { %632 = vrot.lane.b32.xlu0 %v1695_v59, %s1498_s21  ;;  %530 = vrot.lane.b32.xlu1 %v1695_v59, %s1499_s22  ;;  %v607_v61 = vmul.f32 %v1695_v59, %v599_v58  ;;  %v667_v6 = vmul.f32 %v1695_v59, %v659_v2  ;;  %v566_v10 = vmul.f32 %v1695_v59, %v558_v55 }
 0x16a   : > { %v562_v11 = vsel %vm561_vm9, %v558_v55, %v560_v60  ;;  %v708_v22 = vmul.f32 %v700_v19, %v1695_v59  ;;  %v768_v34 = vmul.f32 %v760_v27, %v1695_v59  ;;  %v520_v48 = vmul.f32 %v1695_v59, %v513_v41 }
 0x16c   : > { %v545_v62 = vld [vmem:[#allocation2 + $0x10] sm:$0xff]  ;;  %v601_v63 = vpop.permute.xlu1 %600 }
 0x16d   : > { %v1702_v0 = vld [vmem:[#allocation2 + $0x8] sm:$0xff]  ;;  %v603_v1 = vsel %vm602_vm7, %v599_v58, %v601_v63  ;;  %613 = vrot.lane.b32.xlu1 %v607_v61, %s1883_s23  ;;  %v609_v5 = vmul.f32 %v601_v63, %v545_v62  ;;  %v568_v16 = vmul.f32 %v560_v60, %v545_v62 }
 0x16e   : > { %v1441_v3 = vpack.i.bf16 %v545_v62, %v1702_v0  ;;  %v608_v4 = vmul.f32 %v603_v1, %v1702_v0  ;;  %v567_v15 = vmul.f32 %v562_v11, %v1702_v0  ;;  %v521_v46 = vmul.f32 %v1702_v0, %v517_v40  ;;  %v1368_v40 = vld [vmem:[%s1872_s3 + $0x1] ss:$2 sm:$0x3] }
 0x16f   : > { %v1049_v41 = vrot.slane %v1368_v40, %v1632_v24 }
 0x170   : > { %1442 = vrot.lane.b32.xlu0 %v1441_v3, %s1499_s22  ;;  %v661_v7 = vpop.permute.xlu1 %660  ;;  %v1456_v12 = vpack.i.bf16 %v609_v5, %v608_v4  ;;  %v1451_v20 = vpack.i.bf16 %v568_v16, %v567_v15 }
 0x171   : > { %v663_v9 = vsel %vm662_vm8, %v659_v2, %v661_v7  ;;  %673 = vrot.lane.b32.xlu1 %v667_v6, %s1881_s24  ;;  %v669_v14 = vmul.f32 %v661_v7, %v545_v62 }
 0x172   : > { %v668_v13 = vmul.f32 %v663_v9, %v1702_v0 }
 0x174   : > { %572 = vrot.lane.b32.xlu0 %v566_v10, %s1502_s25  ;;  %v1461_v17 = vpack.i.bf16 %v669_v14, %v668_v13  ;;  %v702_v18 = vpop.permute.xlu1 %701 }
 0x175   : > { %1457 = vrot.lane.b32.xlu1 %v1456_v12, %s1883_s23  ;;  %v704_v21 = vsel %vm703_vm10, %v700_v19, %v702_v18  ;;  %v710_v25 = vmul.f32 %v702_v18, %v545_v62 }
 0x176   : > { %v709_v23 = vmul.f32 %v704_v21, %v1702_v0 }
 0x178   : > { %1447 = vrot.lane.b32.xlu0 %v1441_v3, %s1498_s21  ;;  %v762_v26 = vpop.permute.xlu1 %761  ;;  %v1471_v28 = vpack.i.bf16 %v710_v25, %v709_v23 }
 0x179   : > { %1462 = vrot.lane.b32.xlu1 %v1461_v17, %s1881_s24  ;;  %v764_v29 = vsel %vm763_vm11, %v760_v27, %v762_v26  ;;  %v770_v30 = vmul.f32 %v762_v26, %v545_v62 }
 0x17a   : > { %v769_v32 = vmul.f32 %v764_v29, %v1702_v0 }
 0x17c   : > { %1452 = vrot.lane.b32.xlu0 %v1451_v20, %s1502_s25 }
 0x17d   : > { %1467 = vrot.lane.b32.xlu1 %v1441_v3, %s1503_s28 }
 0x180   : > { %714 = vrot.lane.b32.xlu0 %v708_v22, %s1504_s29 }
 0x181   : > { %733 = vrot.lane.b32.xlu1 %v1695_v59, %s1503_s28 }
 0x184   : > { %1472 = vrot.lane.b32.xlu0 %v1471_v28, %s1504_s29 }
 0x185   : > { %778 = vrot.lane.b32.xlu1 %v770_v30, %s1506_s12 }
 0x188   : > { %776 = vrot.lane.b32.xlu0 %v769_v32, %s1506_s12 }
 0x189   : > { %884 = vperm.xlu1 %1476, %v881_v33  }
 0x18c   : > { %774 = vrot.lane.b32.xlu0 %v768_v34, %s1506_s12 }
 0x190   : > { %892 = vperm.xlu0 %1477, %v889_v35   ;;  %v787_v35 = vld [vmem:[%s1873_s4] sm:$0xf] }
 0x1db   : > { %v531_v36 = vpop.permute.xlu1 %530  ;;  %v633_v38 = vpop.permute.xlu0 %632 }
 0x1df   : > { %v614_v39 = vpop.permute.xlu1 %613 }
 0x1e2   : > { %v1443_v42 = vpop.permute.xlu0 %1442 }
 0x1e3   : > { %v1445_v43 = vunpack.i.h.bf16 %v1443_v42  ;;  %v1444_v44 = vunpack.i.l.bf16 %v1443_v42  ;;  %v674_v45 = vpop.permute.xlu1 %673  ;;  %v1053_v42 = vrot.slane %v1368_v40, %v1681_v47 }
 0x1e5   : > { %v538_v49 = vsel %vm536_vm12, %v1444_v44, %v1445_v43  ;;  %v537_v50 = vsel %vm536_vm12, %v531_v36, %v1444_v44  ;;  %v990_v36 = vld [vmem:[%s1872_s3] ss:$2 sm:$0x3]  ;;  %v1054_v43 = vcombine.low %v1049_v41, %v1053_v42 }
 0x1e6   : > { %v573_v51 = vpop.permute.xlu0 %572  ;;  %v1393_v52 = vpack.c.bf16 %v538_v49, %v521_v46  ;;  %v1395_v53 = vpack.c.bf16 %v537_v50, %v520_v48  ;;  %v995_v37 = vrot.slane %v990_v36, %v1632_v24 }
 0x1e7   : > { %v1458_v54 = vpop.permute.xlu1 %1457 }
 0x1e8   : > { %1394 = vmatprep.subr.bf16.mxu1 %v1393_v52  ;;  %v1460_v57 = vunpack.i.h.bf16 %v1458_v54  ;;  %v1459_v58 = vunpack.i.l.bf16 %v1458_v54  ;;  %v1367_v52 = vld [vmem:[%s1872_s3 + $0x1] ss:$2 sm:$0x3] }
 0x1e9   : > { %1396 = vmatpush1.bf16.msra.mxu1 %v1395_v53 }
 0x1ea   : > { %v1448_v55 = vpop.permute.xlu0 %1447  ;;  %v621_v3 = vsel %vm1885_vm13, %v1459_v58, %v1460_v57  ;;  %v620_v4 = vsel %vm1885_vm13, %v614_v39, %v1459_v58  ;;  %vm806_vm13 = vcmask 588800   ;;  %v963_v57 = vrot.slane %v1367_v52, %v1681_v47 }
 0x1eb   : > { %v1463_v56 = vpop.permute.xlu1 %1462  ;;  %v1450_v60 = vunpack.i.h.bf16 %v1448_v55  ;;  %v1449_v61 = vunpack.i.l.bf16 %v1448_v55 }
 0x1ec   : > { %v1465_v62 = vunpack.i.h.bf16 %v1463_v56  ;;  %v1464_v63 = vunpack.i.l.bf16 %v1463_v56  ;;  %v959_v56 = vrot.slane %v1367_v52, %v1632_v24 }
 0x1ed   : > { %v640_v7 = vsel %vm638_vm15, %v1449_v61, %v1450_v60  ;;  %v639_v14 = vsel %vm638_vm15, %v633_v38, %v1449_v61  ;;  %v999_v38 = vrot.slane %v990_v36, %v1681_v47 }
 0x1ee   : > { %v1453_v59 = vpop.permute.xlu0 %1452  ;;  %v681_v9 = vsel %vm679_vm0, %v1464_v63, %v1465_v62  ;;  %v680_v15 = vsel %vm679_vm0, %v674_v45, %v1464_v63  ;;  %v964_v60 = vcombine.low %v959_v56, %v963_v57  ;;  %v1369_v63 = vld [vmem:[%s1872_s3 + $0x1] ss:$2 sm:$0x3] }
 0x1ef   : > { %v1455_v0 = vunpack.i.h.bf16 %v1453_v59  ;;  %v1454_v1 = vunpack.i.l.bf16 %v1453_v59  ;;  %v1468_v2 = vpop.permute.xlu1 %1467  ;;  %v1401_v13 = vpack.c.bf16 %v681_v9, %v640_v7  ;;  %v1403_v22 = vpack.c.bf16 %v680_v15, %v639_v14  ;;  %v1262_v56 = vld [vmem:[%s1877_s8] sm:$0xf] }
 0x1f0   : > { %v1470_v16 = vunpack.i.h.bf16 %v1468_v2  ;;  %v1469_v17 = vunpack.i.l.bf16 %v1468_v2  ;;  %v1000_v39 = vcombine.low %v995_v37, %v999_v38  ;;  %v1270_v57 = vld [vmem:[%s1878_s9] sm:$0xf] }
 0x1f1   : > { %v580_v5 = vsel %vm578_vm14, %v1454_v1, %v1455_v0  ;;  %v579_v6 = vsel %vm578_vm14, %v573_v51, %v1454_v1  ;;  %v1140_v0 = vrot.slane %v1369_v63, %v1632_v24  ;;  %v1144_v1 = vrot.slane %v1369_v63, %v1681_v47 }
 0x1f2   : > { %v715_v10 = vpop.permute.xlu0 %714  ;;  %v1397_v11 = vpack.c.bf16 %v621_v3, %v580_v5  ;;  %v1399_v12 = vpack.c.bf16 %v620_v4, %v579_v6  ;;  %v741_v26 = vsel %vm739_vm3, %v1469_v17, %v1470_v16  ;;  %1001 = vrot.lane.b32.xlu0 %v1000_v39, %s1494_s27  ;;  %v916_v4 = vld [vmem:[%s1872_s3] ss:$2 sm:$0x3] }
 0x1f3   : > { %v734_v18 = vpop.permute.xlu1 %733  ;;  %v1145_v2 = vcombine.low %v1140_v0, %v1144_v1  ;;  %v921_v7 = vrot.slane %v916_v4, %v1632_v24  ;;  %v925_v9 = vrot.slane %v916_v4, %v1681_v47 }
 0x1f4   : > { %1398 = vmatprep.subr.bf16.mxu1 %v1397_v11  ;;  %v740_v23 = vsel %vm739_vm3, %v734_v18, %v1469_v17 }
 0x1f5   : > { %1400 = vmatpush1.bf16.msra.mxu1 %v1399_v12  ;;  %v926_v11 = vcombine.low %v921_v7, %v925_v9 }
 0x1f6   : > { %v1473_v19 = vpop.permute.xlu0 %1472  ;;  %1402 = vmatprep.subr.bf16.mxu1 %v1401_v13  ;;  %1055 = vrot.lane.b32.xlu0 %v1054_v43, %s1495_s11 }
 0x1f7   : > { %v1475_v20 = vunpack.i.h.bf16 %v1473_v19  ;;  %v1474_v21 = vunpack.i.l.bf16 %v1473_v19  ;;  %v779_v31 = vpop.permute.xlu1 %778 }
 0x1f9   : > { %1404 = vmatpush1.bf16.msra.mxu1 %v1403_v22  ;;  %v722_v25 = vsel %vm720_vm5, %v1474_v21, %v1475_v20  ;;  %v721_v27 = vsel %vm720_vm5, %v715_v10, %v1474_v21 }
 0x1fa   : > { %v777_v28 = vpop.permute.xlu0 %776  ;;  %v1405_v29 = vpack.c.bf16 %v741_v26, %v722_v25  ;;  %v1407_v30 = vpack.c.bf16 %v740_v23, %v721_v27 }
 0x1fb   : > { %v782_v32 = vsel %vm1886_vm6, %v777_v28, %v779_v31 }
 0x1fc   : > { %1406 = vmatprep.subr.bf16.mxu1 %v1405_v29 }
 0x1fd   : > { %1408 = vmatpush1.bf16.msra.mxu1 %v1407_v30 }
 0x1fe   : > { %v775_v33 = vpop.permute.xlu0 %774  ;;  %826 = vmatprep.subr.mxu1 %v782_v32 }
 0x1ff   : > { %v781_v34 = vsel %vm1886_vm6, %v775_v33, %v777_v28 }
 0x201   : > { %827 = vmatpush1.msra.mxu1 %v781_v34 }
 0x202   : > { %1366 = vmatmul.mubr.msk.f32.vlgmr.msra.gmra.mrb[0].mxu1 %vm806_vm13, %v787_v35  ;;  %vm900_vm13 = vcmask 273544  }
 0x203   : > { %901 = vst.msk [vmem:[#allocation3 + $0x8] sm:$0xf] %vm900_vm13, %v1491_v8  ;;  %v1081_v8 = vld [vmem:[%s1872_s3] ss:$2 sm:$0x3]  ;;  %vm911_vm13 = vcmask 1047556  }
 0x204   : > { %v1086_v61 = vrot.slane %v1081_v8, %v1632_v24  ;;  %v1090_v62 = vrot.slane %v1081_v8, %v1681_v47  ;;  %vm912_vm6 = vmor %vm911_vm13, %vm484_vm2 }
 0x206   : > { %v1091_v59 = vcombine.low %v1086_v61, %v1090_v62 }
 0x208   : > { %v885_v44 = vpop.permute.xlu1 %884 }
 0x20f   : > { %v893_v46 = vpop.permute.xlu0 %892 }
 0x264   : > { %v1002_v24 = vpop.permute.xlu0 %1001 }
 0x265   : > { %v1003_v19 = vrot.slane %v1002_v24, 4 }
 0x267   : > { %v1004_v25 = vsel %vm602_vm7, %v1003_v19, %v1002_v24 }
 0x268   : > { %v1056_v27 = vpop.permute.xlu0 %1055 }
 0x269   : > { %v1057_v30 = vrot.slane %v1056_v27, 4 }
 0x26b   : > { %v1058_v36 = vsel %vm662_vm8, %v1057_v30, %v1056_v27  ;;  %vm1184_vm8 = vcmask 1043456  }
 0x2d5   : > { %v876_v45 = vpop.f32.mrb[0].mxu1 }
 0x2d6   : > { %v887_v48 = vmul.f32 %v885_v44, %v876_v45  ;;  %v878_v49 = vpop.f32.mrb[1].mxu1 }
 0x2d7   : > { %v888_v50 = vmul.f32 %v885_v44, %v878_v49 }
 0x2d8   : > { %v895_v51 = vadd.f32 %v893_v46, %v887_v48 }
 0x2d9   : > { %v896_v53 = vadd.f32 %v893_v46, %v888_v50 }
 0x2da   : > { %v897_v54 = vmax.f32 %v895_v51, 0.0 }
 0x2db   : > { %v898_v55 = vmax.f32 %v896_v53, 0.0 }
 0x2dd   : > { %v904_v58 = vcombine.low %v897_v54, %v898_v55 }
 0x2df   : > { %905 = vrot.lane.b32.xlu1 %v904_v58, %s1492_s30 }
 0x2e3   : > { %965 = vrot.lane.b32.xlu1 %v964_v60, %s1493_s26  ;;  %s1888_s26 = smov 112  }
 0x2e7   : > { %1092 = vrot.lane.b32.xlu1 %v1091_v59, %s1496_s16  ;;  %s1889_s16 = smov 110  }
 0x2eb   : > { %1146 = vrot.lane.b32.xlu1 %v1145_v2, %s1497_s20 }
 0x351   : > { %v906_v3 = vpop.permute.xlu1 %905 }
 0x352   : > { %v907_v5 = vrot.slane %v906_v3, 4 }
 0x354   : > { %v908_v6 = vsel %vm469_vm1, %v907_v5, %v906_v3  ;;  %914 = vst.msk [vmem:[#allocation3 + $0x8] sm:$0xf] %vm487_vm4, %v907_v5  ;;  %vm1890_vm1 = vcmask 916480   ;;  %vm1892_vm4 = vcmask 769024  }
 0x355   : > { %913 = vst.msk [vmem:[#allocation3] sm:$0xff] %vm912_vm6, %v908_v6  ;;  %v966_v10 = vpop.permute.xlu1 %965  ;;  %vm1891_vm2 = vmmov %vm1890_vm1 }
 0x356   : > { %v967_v20 = vrot.slane %v966_v10, 4  ;;  %vm1893_vm7 = vmmov %vm1892_vm4 }
 0x358   : > { %v968_v28 = vsel %vm561_vm9, %v967_v20, %v966_v10  ;;  %vm1180_vm9 = vcmask 293888  }
 0x359   : > { %v1093_v13 = vpop.permute.xlu1 %1092 }
 0x35a   : > { %v1094_v16 = vrot.slane %v1093_v13, 4 }
 0x35b   : > { %v1026_v14 = vld [vmem:[#allocation3 + $0x8] sm:$0xf] }
 0x35c   : > { %v915_v12 = vld [vmem:[#allocation3] sm:$0xff]  ;;  %1034 = vrot.lane.b32.xlu0 %v1026_v14, %s1498_s21  ;;  %v1080_v17 = vld [vmem:[#allocation3 + $0x8] sm:$0xf]  ;;  %v1095_v40 = vsel %vm703_vm10, %v1094_v16, %v1093_v13 }
 0x35d   : > { %v928_v15 = vmul.f32 %v926_v11, %v915_v12  ;;  %1123 = vrot.lane.b32.xlu1 %v915_v12, %s1503_s28  ;;  %v1099_v47 = vmul.f32 %v1094_v16, %v1080_v17  ;;  %v1481_v21 = vld [vmem:[#allocation3 + $0x8] ss:$0 sps:$4 sm:$0xff]   ;;  %v1007_v29 = vmul.f32 %v1004_v25, %v915_v12  ;;  %v971_v31 = vmul.f32 %v968_v28, %v915_v12  ;;  %v1147_v41 = vpop.permute.xlu1 %1146 }
 0x35e   : > { %v953_v22 = vld [vmem:[#allocation3 + $0x8] sm:$0xf]  ;;  %v1119_v34 = vcombine.low %v915_v12, %v915_v12  ;;  %v1029_v35 = vcombine.high %v915_v12, %v915_v12  ;;  %v1061_v38 = vmul.f32 %v1058_v36, %v915_v12  ;;  %v1098_v44 = vmul.f32 %v1095_v40, %v915_v12 }
 0x35f   : > { %932 = vst [vmem:[#allocation5] sm:$0xf] %v928_v15  ;;  %v930_v18 = vcombine.high %v928_v15, %v928_v15  ;;  %v1482_v23 = vld [vmem:[#allocation3 + $0x8] ss:$0 sps:$4 sm:$0xff]   ;;  %v972_v26 = vmul.f32 %v967_v20, %v953_v22  ;;  %v975_v42 = vcombine.high %v971_v31, %v971_v31  ;;  %v1148_v45 = vrot.slane %v1147_v41, 4 }
 0x360   : > { %942 = vrot.lane.b32.xlu0 %v915_v12, %s1499_s22  ;;  %v1043_v32 = vld [vmem:[#allocation3 + $0x8] sm:$0xf]  ;;  %v1011_v46 = vcombine.low %v1007_v29, %v1007_v29  ;;  %v1065_v50 = vcombine.low %v1061_v38, %v1061_v38  ;;  %v1102_v52 = vcombine.high %v1098_v44, %v1098_v44 }
 0x361   : > { %1030 = vrot.lane.b32.xlu1 %v915_v12, %s1498_s21  ;;  %933 = vst [vmem:[#allocation5 + $0x8] sm:$0xf] %v930_v18  ;;  %v1062_v33 = vmul.f32 %v1057_v30, %v1043_v32  ;;  %v989_v39 = vld [vmem:[#allocation3 + $0x8] sm:$0xf]  ;;  %v1149_v49 = vsel %vm763_vm11, %v1148_v45, %v1147_v41 }
 0x362   : > { %v1008_v43 = vmul.f32 %v1003_v19, %v989_v39  ;;  %v1152_v51 = vmul.f32 %v1149_v49, %v915_v12  ;;  %v1134_v54 = vld [vmem:[#allocation3 + $0x8] sm:$0xf] }
 0x363   : > { %v1066_v37 = vcombine.low %v1062_v33, %v1062_v33  ;;  %v1153_v55 = vmul.f32 %v1148_v45, %v1134_v54 }
 0x364   : > { %1107 = vrot.lane.b32.xlu0 %v1099_v47, %s1504_s29  ;;  %v1012_v48 = vcombine.low %v1008_v43, %v1008_v43  ;;  %v1156_v53 = vcombine.high %v1152_v51, %v1152_v51 }
 0x365   : > { %944 = vrot.lane.b32.xlu1 %v1481_v21, %s1499_s22 }
 0x368   : > { %1125 = vrot.lane.b32.xlu0 %v1482_v23, %s1503_s28 }
 0x369   : > { %980 = vrot.lane.b32.xlu1 %v972_v26, %s1502_s25 }
 0x36c   : > { %1015 = vrot.lane.b32.xlu0 %v1007_v29, %s1888_s26 }
 0x36d   : > { %976 = vrot.lane.b32.xlu1 %v971_v31, %s1502_s25 }
 0x370   : > { %940 = vrot.lane.b32.xlu0 %v1119_v34, %s1499_s22 }
 0x371   : > { %1032 = vrot.lane.b32.xlu1 %v1029_v35, %s1498_s21 }
 0x374   : > { %1071 = vrot.lane.b32.xlu0 %v1066_v37, %s1889_s16 }
 0x375   : > { %1069 = vrot.lane.b32.xlu1 %v1061_v38, %s1889_s16 }
 0x378   : > { %978 = vrot.lane.b32.xlu0 %v975_v42, %s1502_s25 }
 0x379   : > { %1103 = vrot.lane.b32.xlu1 %v1098_v44, %s1504_s29 }
 0x37c   : > { %1013 = vrot.lane.b32.xlu0 %v1011_v46, %s1888_s26 }
 0x37d   : > { %1017 = vrot.lane.b32.xlu1 %v1012_v48, %s1888_s26  ;;  %v1169_v48 = vld [vmem:[%s1876_s7] sm:$0xf] }
 0x380   : > { %1067 = vrot.lane.b32.xlu0 %v1065_v50, %s1889_s16 }
 0x381   : > { %1105 = vrot.lane.b32.xlu1 %v1102_v52, %s1504_s29 }
 0x384   : > { %1121 = vrot.lane.b32.xlu0 %v1119_v34, %s1503_s28 }
 0x385   : > { %1159 = vrot.lane.b32.xlu1 %v1156_v53, %s1506_s12 }
 0x388   : > { %1161 = vrot.lane.b32.xlu0 %v1153_v55, %s1506_s12 }
 0x389   : > { %1157 = vrot.lane.b32.xlu1 %v1152_v51, %s1506_s12  ;;  %s1894_s12 = sshll.u32 %s1896_s14, 3 }
 0x38a   : > { %s376_s23 = scalar_lea.vmem %s1879_s10, %s1894_s12 }
 0x38c   : > { %1265 = vperm.xlu0 %1477, %v1262_v56  }
 0x38d   : > { %1273 = vperm.xlu1 %1476, %v1270_v57  }
 0x3ce   : > { %v1035_v8 = vpop.permute.xlu0 %1034 }
 0x3cf   : > { %v1124_v58 = vpop.permute.xlu1 %1123 }
 0x3d2   : > { %v943_v60 = vpop.permute.xlu0 %942 }
 0x3d3   : > { %v1031_v61 = vpop.permute.xlu1 %1030 }
 0x3d6   : > { %v1108_v62 = vpop.permute.xlu0 %1107 }
 0x3d7   : > { %v945_v63 = vpop.permute.xlu1 %944 }
 0x3d8   : > { %v947_v59 = vsel %vm536_vm12, %v943_v60, %v945_v63 }
 0x3d9   : > { %951 = vst [vmem:[#allocation5 + $0x8] sm:$0xf0] %v947_v59 }
 0x3da   : > { %v1126_v0 = vpop.permute.xlu0 %1125 }
 0x3db   : > { %v1128_v1 = vsel %vm739_vm3, %v1124_v58, %v1126_v0  ;;  %v981_v2 = vpop.permute.xlu1 %980 }
 0x3dc   : > { %1132 = vst [vmem:[#allocation5 + $0x38] sm:$0xf0] %v1128_v1 }
 0x3de   : > { %v1016_v3 = vpop.permute.xlu0 %1015 }
 0x3df   : > { %v977_v4 = vpop.permute.xlu1 %976 }
 0x3e0   : > { %v1171_v30 = vld [vmem:[#allocation5 + $0x8] sm:$0xff] }
 0x3e2   : > { %v941_v5 = vpop.permute.xlu0 %940 }
 0x3e3   : > { %v946_v6 = vsel %vm536_vm12, %v941_v5, %v943_v60  ;;  %v1033_v7 = vpop.permute.xlu1 %1032 }
 0x3e4   : > { %950 = vst [vmem:[#allocation5] sm:$0xf0] %v946_v6  ;;  %v1036_v9 = vsel %vm638_vm15, %v1031_v61, %v1033_v7  ;;  %v1037_v10 = vsel %vm638_vm15, %v1033_v7, %v1035_v8 }
 0x3e5   : > { %1040 = vst [vmem:[#allocation5 + $0x20] sm:$0xf] %v1036_v9  ;;  %1041 = vst [vmem:[#allocation5 + $0x28] sm:$0xf] %v1037_v10 }
 0x3e6   : > { %v1072_v11 = vpop.permute.xlu0 %1071 }
 0x3e7   : > { %v1070_v12 = vpop.permute.xlu1 %1069 }
 0x3e8   : > { %v1074_v13 = vsel %vm679_vm0, %v1070_v12, %v1072_v11 }
 0x3e9   : > { %1078 = vst [vmem:[#allocation5 + $0x28] sm:$0xf0] %v1074_v13 }
 0x3ea   : > { %v979_v14 = vpop.permute.xlu0 %978 }
 0x3eb   : > { %v982_v15 = vsel %vm578_vm14, %v977_v4, %v979_v14  ;;  %v983_v16 = vsel %vm578_vm14, %v979_v14, %v981_v2  ;;  %v1104_v17 = vpop.permute.xlu1 %1103  ;;  %v1170_v33 = vld [vmem:[#allocation5] sm:$0xff] }
 0x3ec   : > { %986 = vst [vmem:[#allocation5 + $0x10] sm:$0xf] %v982_v15  ;;  %987 = vst [vmem:[#allocation5 + $0x18] sm:$0xf] %v983_v16 }
 0x3ee   : > { %v1014_v18 = vpop.permute.xlu0 %1013 }
 0x3ef   : > { %v1019_v24 = vsel %vm1890_vm1, %v1014_v18, %v1016_v3  ;;  %v1018_v47 = vpop.permute.xlu1 %1017 }
 0x3f0   : > { %1023 = vst [vmem:[#allocation5 + $0x10] sm:$0xf0] %v1019_v24  ;;  %v1020_v19 = vsel %vm1891_vm2, %v1016_v3, %v1018_v47  ;;  %v1175_v39 = vld [vmem:[#allocation5 + $0x28] sm:$0xff] }
 0x3f1   : > { %1024 = vst [vmem:[#allocation5 + $0x18] sm:$0xf0] %v1020_v19 }
 0x3f2   : > { %v1068_v20 = vpop.permute.xlu0 %1067 }
 0x3f3   : > { %v1073_v21 = vsel %vm679_vm0, %v1068_v20, %v1070_v12  ;;  %v1106_v22 = vpop.permute.xlu1 %1105 }
 0x3f4   : > { %1077 = vst [vmem:[#allocation5 + $0x20] sm:$0xf0] %v1073_v21  ;;  %v1109_v23 = vsel %vm720_vm5, %v1104_v17, %v1106_v22  ;;  %v1110_v25 = vsel %vm720_vm5, %v1106_v22, %v1108_v62 }
 0x3f5   : > { %1113 = vst [vmem:[#allocation5 + $0x30] sm:$0xf] %v1109_v23  ;;  %1114 = vst [vmem:[#allocation5 + $0x38] sm:$0xf] %v1110_v25 }
 0x3f6   : > { %v1122_v26 = vpop.permute.xlu0 %1121 }
 0x3f7   : > { %v1127_v27 = vsel %vm739_vm3, %v1122_v26, %v1124_v58  ;;  %v1160_v28 = vpop.permute.xlu1 %1159  ;;  %v1172_v29 = vld [vmem:[#allocation5 + $0x10] sm:$0xff] }
 0x3f8   : > { %1131 = vst [vmem:[#allocation5 + $0x30] sm:$0xf0] %v1127_v27  ;;  %v1173_v31 = vld [vmem:[#allocation5 + $0x18] sm:$0xff]  ;;  %v1411_v35 = vpack.c.bf16 %v1172_v29, %v1170_v33 }
 0x3f9   : > { %v1409_v32 = vpack.c.bf16 %v1173_v31, %v1171_v30 }
 0x3fa   : > { %v1162_v34 = vpop.permute.xlu0 %1161 }
 0x3fb   : > { %v1164_v36 = vsel %vm1892_vm4, %v1160_v28, %v1162_v34  ;;  %1410 = vmatprep.subr.bf16.mxu0 %v1409_v32  ;;  %v1158_v37 = vpop.permute.xlu1 %1157  ;;  %v1174_v42 = vld [vmem:[#allocation5 + $0x20] sm:$0xff] }
 0x3fc   : > { %1168 = vst [vmem:[#allocation5 + $0x48] sm:$0xf] %v1164_v36  ;;  %v1163_v38 = vsel %vm1893_vm7, %v1158_v37, %v1160_v28  ;;  %1412 = vmatpush1.bf16.msra.mxu0 %v1411_v35  ;;  %v1177_v40 = vld [vmem:[#allocation5 + $0x38] sm:$0xff] }
 0x3fd   : > { %1167 = vst [vmem:[#allocation5 + $0x40] sm:$0xf] %v1163_v38  ;;  %v1413_v41 = vpack.c.bf16 %v1177_v40, %v1175_v39 }
 0x3ff   : > { %1414 = vmatprep.subr.bf16.mxu0 %v1413_v41  ;;  %v1176_v43 = vld [vmem:[#allocation5 + $0x30] sm:$0xff] }
 0x400   : > { %v1415_v44 = vpack.c.bf16 %v1176_v43, %v1174_v42 }
 0x402   : > { %1416 = vmatpush1.bf16.msra.mxu0 %v1415_v44 }
 0x403   : > { %v1179_v45 = vld [vmem:[#allocation5 + $0x48] sm:$0xf] }
 0x404   : > { %1370 = vmatprep.subr.msk.mxu0 %vm1184_vm8, %v1179_v45  ;;  %v1178_v46 = vld [vmem:[#allocation5 + $0x40] sm:$0xf] }
 0x406   : > { %1371 = vmatpush1.msk.msra.mxu0 %vm1184_vm8, %v1178_v46 }
 0x407   : > { %1372 = vmatmul.mubr.msk.f32.vlgmr.msra.gmra.mrb[2].mxu0 %vm1180_vm9, %v1169_v48 }
 0x40b   : > { %v1266_v49 = vpop.permute.xlu0 %1265 }
 0x40c   : > { %v1274_v53 = vpop.permute.xlu1 %1273 }
 0x4da   : > { %v1257_v50 = vpop.f32.mrb[2].mxu0 }
 0x4db   : > { %v1268_v51 = vmul.f32 %v1266_v49, %v1257_v50  ;;  %v1259_v52 = vpop.f32.mrb[3].mxu0 }
 0x4dc   : > { %v1269_v54 = vmul.f32 %v1266_v49, %v1259_v52 }
 0x4dd   : > { %v1276_v55 = vadd.f32 %v1274_v53, %v1268_v51 }
 0x4de   : > { %v1277_v56 = vadd.f32 %v1274_v53, %v1269_v54 }
 0x4df   : > { %v1278_v57 = vmax.f32 %v1276_v55, 0.0 }
 0x4e0   : > { %v1279_v8 = vmax.f32 %v1277_v56, 0.0 }
 0x4e2   : > { %v1282_v58 = vcombine.low %v1278_v57, %v1279_v8 }
 0x4e4   : > { %1284 = vst [vmem:[%s376_s23] sm:$0xff] %v1282_v58 }
 0x4e5 PF: > { %s20_s13 = sadd.s32 1, %s1489_s13  }
 0x4e6   : > { %p17_p4 = scmp.ge.s32.totalorder %s20_s13, 4  }
 0x4e8   :  { %19 = sbr.rel (!%p17_p4) target bundleno = 1 (0x1), region = 94 }

</bundles_post_ra>
